<compile_context>
chip_gen: v7x
topology: tpu7x:2x2x1
jax: 0.10.0
libtpu: 0.0.40
codegen_flags: <defaults>
</compile_context>

<pallas_src>
import functools
import math

import jax
import jax.numpy as jnp
from jax.experimental import pallas as pl
from jax.experimental.pallas import tpu as pltpu

_LANE = 128


def _resnet3dconv_kernel(x_ref, w_in_ref, b_in_ref, w0_ref, b0_ref,
                         w1_ref, b1_ref, w_out_ref, b_out_ref, o_ref,
                         *, n_blocks, unroll_blocks, chunk, n_chunks,
                         chunk_unroll):
    w_dtype = w_in_ref.dtype

    def block(h, w0, b0, w1, b1):
        # Identity shortcut: size_in == size_out == d_hidden inside every block.
        net = jnp.dot(w0, jnp.maximum(h, 0.0).astype(w_dtype),
                      preferred_element_type=jnp.float32) + b0
        dx = jnp.dot(w1, jnp.maximum(net, 0.0).astype(w_dtype),
                     preferred_element_type=jnp.float32) + b1
        return h + dx

    def run_blocks(h):
        if unroll_blocks:
            for blk in range(n_blocks):
                h = block(h, w0_ref[blk], b0_ref[blk], w1_ref[blk], b1_ref[blk])
            return h
        body = lambda blk, h: block(h, w0_ref[blk], b0_ref[blk],
                                    w1_ref[blk], b1_ref[blk])
        # Visible trip count + partial unroll lets the scheduler hoist the next
        # block's weight-slice load under the current block's MXU work.
        return jax.lax.fori_loop(0, n_blocks, body, h, unroll=2)

    def process_chunk(off):
        # One 512-lane (by default) sub-chunk of the spatial tile: bounds the
        # live set of f32 intermediates so the big tile doesn't spill vregs.
        x_c = x_ref[:, pl.ds(off, chunk)]
        # conv_in: f32 accumulation on the MXU, operands in their native dtype.
        h = jnp.dot(w_in_ref[...], x_c, preferred_element_type=jnp.float32)
        h = h + b_in_ref[...]
        h = run_blocks(h)
        out = jnp.dot(w_out_ref[...], jnp.maximum(h, 0.0).astype(w_dtype),
                      preferred_element_type=jnp.float32) + b_out_ref[...]
        o_ref[:, pl.ds(off, chunk)] = out.astype(o_ref.dtype)

    if n_chunks == 1:
        process_chunk(0)
    else:
        def body(c, carry):
            process_chunk(pl.multiple_of(c * chunk, chunk))
            return carry
        jax.lax.fori_loop(0, n_chunks, body, 0, unroll=chunk_unroll)


def resnet3dconv_forward(x_ncdhw, params, *, spatial_tile=4096, chunk=512,
                         compute_dtype=None):
    """Fused Resnet3DConv forward.  x: (N, C_in, D, H, W) -> (N, C_out, D, H, W).

    compute_dtype=jnp.bfloat16 casts the weight matrices to bf16 (biases and
    the residual accumulator stay f32, matmuls accumulate in f32) — preferred
    on v6e/v7x where the MXU is bf16-native.
    """
    w_in, b_in, w0s, b0s, w1s, b1s, w_out, b_out = params
    if compute_dtype is not None:
        w_in, w0s, w1s, w_out = (w.astype(compute_dtype)
                                 for w in (w_in, w0s, w1s, w_out))
        b_in, b0s, b1s, b_out = (b.astype(jnp.float32)
                                 for b in (b_in, b0s, b1s, b_out))

    N, C, D, H, W = x_ncdhw.shape
    d_hidden, d_in = w_in.shape
    d_out = w_out.shape[0]
    n_blocks = int(w0s.shape[0])
    assert C == d_in and d_in > 0
    assert n_blocks >= 1
    assert spatial_tile % _LANE == 0 and chunk % _LANE == 0

    S = D * H * W
    x3 = x_ncdhw.reshape(N, C, S)                    # pure reshape, no transpose

    # ---- Tiling: big lane-dense spatial tiles, sub-chunked inside the kernel.
    S_lanes = pl.cdiv(S, _LANE) * _LANE
    ts = min(spatial_tile, S_lanes)
    # v7x has 2 TensorCores fed by "parallel" grid axes: guarantee >= 2 grid
    # steps whenever the problem allows it (no-op on v5e/v6e, which are 1-TC).
    if N * pl.cdiv(S_lanes, ts) < 2 and S_lanes >= 2 * _LANE:
        ts = pl.cdiv(pl.cdiv(S_lanes, 2), _LANE) * _LANE
    chunk_eff = min(chunk, ts)
    if ts % chunk_eff:
        ts = pl.cdiv(ts, chunk_eff) * chunk_eff
    n_chunks = ts // chunk_eff
    S_pad = pl.cdiv(S, ts) * ts
    if S_pad != S:
        x3 = jnp.pad(x3, ((0, 0), (0, 0), (0, S_pad - S)))

    grid = (N, S_pad // ts)

    # Weights/biases: constant index_map -> resident in VMEM, single-buffered.
    # (If xprof ever shows these re-DMA'd per grid step, hoist to pl.ANY +
    #  one-time make_async_copy; for now the revisit optimization covers it.)
    def wspec(shape):
        nd = len(shape)
        return pl.BlockSpec(shape, lambda n, s, _nd=nd: (0,) * _nd,
                            pipeline_mode=pl.Buffered(1))

    # Explicit VMEM budget: computed footprint + headroom, capped at 48 MiB so
    # Mosaic keeps scratch/semaphore headroom on v7x's 64 MiB per-TC VMEM.
    param_list = (w_in, b_in, w0s, b0s, w1s, b1s, w_out, b_out)
    param_bytes = sum(int(p.size) * p.dtype.itemsize for p in param_list)
    assert param_bytes <= (24 << 20), "weight stack too large for resident-VMEM plan"
    x_item = x3.dtype.itemsize
    o_item = x_ncdhw.dtype.itemsize
    tile_bytes = 2 * (d_in * x_item + d_out * o_item) * ts   # double-buffered x/out
    act_bytes = 6 * d_hidden * chunk_eff * 4                 # spill headroom
    vmem_limit = min(48 << 20,
                     int(param_bytes + tile_bytes + act_bytes) + (12 << 20))

    flops = 2 * N * S_pad * (d_in * d_hidden
                             + 2 * n_blocks * d_hidden * d_hidden
                             + d_hidden * d_out)
    bytes_accessed = (int(x3.size) * x_item
                      + N * d_out * S_pad * o_item
                      + param_bytes)

    kernel = functools.partial(
        _resnet3dconv_kernel,
        n_blocks=n_blocks,
        unroll_blocks=n_blocks <= 8,
        chunk=chunk_eff,
        n_chunks=n_chunks,
        chunk_unroll=True if n_chunks <= 8 else 2,
    )

    out3 = pl.pallas_call(
        kernel,
        out_shape=jax.ShapeDtypeStruct((N, d_out, S_pad), x_ncdhw.dtype),
        grid_spec=pltpu.PrefetchScalarGridSpec(
            num_scalar_prefetch=0,
            grid=grid,
            in_specs=[
                pl.BlockSpec((None, d_in, ts), lambda n, s: (n, 0, s)),  # x tile
                wspec((d_hidden, d_in)),                                  # W_in
                wspec((d_hidden, 1)),                                     # b_in
                wspec((n_blocks, d_hidden, d_hidden)),                    # W0 stack
                wspec((n_blocks, d_hidden, 1)),                           # b0 stack
                wspec((n_blocks, d_hidden, d_hidden)),                    # W1 stack
                wspec((n_blocks, d_hidden, 1)),                           # b1 stack
                wspec((d_out, d_hidden)),                                 # W_out
                wspec((d_out, 1)),                                        # b_out
            ],
            out_specs=pl.BlockSpec((None, d_out, ts), lambda n, s: (n, 0, s)),
        ),
        compiler_params=pltpu.CompilerParams(
            dimension_semantics=("parallel", "parallel"),
            vmem_limit_bytes=int(vmem_limit)),
        cost_estimate=pl.CostEstimate(flops=int(flops), transcendentals=0,
                                      bytes_accessed=int(bytes_accessed)),
    )(x3, w_in, b_in, w0s, b0s, w1s, b1s, w_out, b_out)

    if S_pad != S:
        out3 = out3[:, :, :S]
    return out3.reshape(N, d_out, D, H, W)


def init_params(key, d_in, d_out, n_blocks, d_hidden, dtype=jnp.float32,
                zero_init_conv1=False):
    """Parameters in (out, in) matmul layout, mirroring Conv3d(k=1) weights.

    NOTE: the PyTorch module zero-initialises each block's conv_1 weight (so
    blocks are no-ops at init); pass zero_init_conv1=True to match exactly.
    Default uses Kaiming there too so the residual path is numerically
    exercised by the self-test.  Forward math is identical either way.
    """
    ks = jax.random.split(key, 2 + 2 * n_blocks)

    def kaiming(k, fan_in, shape):
        return jax.random.normal(k, shape, dtype) * math.sqrt(2.0 / fan_in)

    w_in = kaiming(ks[0], d_in, (d_hidden, d_in))
    b_in = jnp.zeros((d_hidden, 1), dtype)
    w0s = jnp.stack([kaiming(ks[2 + 2 * i], d_hidden, (d_hidden, d_hidden))
                     for i in range(n_blocks)])
    b0s = jnp.zeros((n_blocks, d_hidden, 1), dtype)
    if zero_init_conv1:
        w1s = jnp.zeros((n_blocks, d_hidden, d_hidden), dtype)
    else:
        w1s = jnp.stack([kaiming(ks[3 + 2 * i], d_hidden, (d_hidden, d_hidden))
                         for i in range(n_blocks)])
    b1s = jnp.zeros((n_blocks, d_hidden, 1), dtype)
    w_out = kaiming(ks[1], d_hidden, (d_out, d_hidden))
    b_out = jnp.zeros((d_out, 1), dtype)
    return w_in, b_in, w0s, b0s, w1s, b1s, w_out, b_out


def reference_forward(x_ncdhw, params):
    """Pure-JAX reference of the PyTorch forward (k=1 Conv3d == channel matmul)."""
    w_in, b_in, w0s, b0s, w1s, b1s, w_out, b_out = params
    N, C, D, H, W = x_ncdhw.shape
    f32 = jnp.float32
    x = x_ncdhw.reshape(N, C, -1).astype(f32)
    h = jnp.einsum('oc,ncs->nos', w_in.astype(f32), x) + b_in.astype(f32)[None]
    for blk in range(w0s.shape[0]):
        net = (jnp.einsum('oc,ncs->nos', w0s[blk].astype(f32),
                          jnp.maximum(h, 0.0)) + b0s[blk].astype(f32)[None])
        dx = (jnp.einsum('oc,ncs->nos', w1s[blk].astype(f32),
                         jnp.maximum(net, 0.0)) + b1s[blk].astype(f32)[None])
        h = h + dx
    out = (jnp.einsum('oc,ncs->nos', w_out.astype(f32),
                      jnp.maximum(h, 0.0)) + b_out.astype(f32)[None])
    return out.reshape(N, w_out.shape[0], D, H, W)


if __name__ == "__main__":
    def check(seed, n, d_in, d, d_out, d_hidden, n_blocks, spatial_tile=4096,
              compute_dtype=None, tol=3e-4):
        key = jax.random.fold_in(jax.random.PRNGKey(0), seed)
        kx, kp = jax.random.split(key)
        x = jax.random.normal(kx, (n, d_in, d, d, d), jnp.float32)
        params = init_params(kp, d_in, d_out, n_blocks, d_hidden)
        out = jax.block_until_ready(
            resnet3dconv_forward(x, params, spatial_tile=spatial_tile,
                                 compute_dtype=compute_dtype))
        ref = reference_forward(x, params)
        assert out.shape == ref.shape == (n, d_out, d, d, d)
        rel_err = jnp.max(jnp.abs(out.astype(jnp.float32) - ref)) / (
            jnp.max(jnp.abs(ref)) + 1e-6)
        assert float(rel_err) < tol, (seed, float(rel_err))

    # Main config: batch=2, C_in=4, spatial=8^3=512 (one lane-dense 512-wide
    # tile per sample, no padding), d_hidden=32, n_blocks=2 (unrolled blocks).
    check(seed=0, n=2, d_in=4, d=8, d_out=4, d_hidden=32, n_blocks=2)
    # Ragged spatial (4^3=64 -> padded to one 128-lane tile), 8 unrolled blocks.
    check(seed=1, n=1, d_in=3, d=4, d_out=4, d_hidden=32, n_blocks=8)
    # Large spatial (16^3=4096): 2 grid tiles of 2048 lanes, 4 sub-chunks each.
    check(seed=2, n=1, d_in=4, d=16, d_out=4, d_hidden=64, n_blocks=3,
          spatial_tile=2048)
    # Single-sample single-tile workload -> tile auto-halved for >=2 grid steps;
    # n_blocks=12 exercises the fori_loop(unroll=2) block path.
    check(seed=3, n=1, d_in=4, d=8, d_out=4, d_hidden=32, n_blocks=12)
    # bf16 MXU-operand path (v6e/v7x preferred): f32 accumulation, relaxed tol.
    check(seed=4, n=2, d_in=4, d=8, d_out=4, d_hidden=32, n_blocks=2,
          compute_dtype=jnp.bfloat16, tol=5e-2)

    print("KERNEL_OK")
</pallas_src>

<mosaic_0001>
module attributes {stable_mosaic.version = 11 : i64} {
  func.func @_resnet3dconv_kernel(%arg0: i32, %arg1: i32, %arg2: memref<1x4x512xf32, #tpu.memory_space<vmem>>, %arg3: memref<32x4xf32, #tpu.memory_space<vmem>>, %arg4: memref<32x1xf32, #tpu.memory_space<vmem>>, %arg5: memref<2x32x32xf32, #tpu.memory_space<vmem>>, %arg6: memref<2x32x1xf32, #tpu.memory_space<vmem>>, %arg7: memref<2x32x32xf32, #tpu.memory_space<vmem>>, %arg8: memref<2x32x1xf32, #tpu.memory_space<vmem>>, %arg9: memref<4x32xf32, #tpu.memory_space<vmem>>, %arg10: memref<4x1xf32, #tpu.memory_space<vmem>>, %arg11: memref<1x4x512xf32, #tpu.memory_space<vmem>>) attributes {dimension_semantics = [#tpu.dimension_semantics<parallel>, #tpu.dimension_semantics<parallel>], iteration_bounds = array<i64: 2, 1>, scalar_prefetch = 0 : i64, scratch_operands = 0 : i64, tpu.core_type = #tpu.core_type<tc>, window_params = [{transform_indices = @transform_0, window_bounds = array<i64: 1, 4, 512>}, {pipeline_mode = #tpu.pipeline_mode<synchronous>, transform_indices = @transform_1, window_bounds = array<i64: 32, 4>}, {pipeline_mode = #tpu.pipeline_mode<synchronous>, transform_indices = @transform_2, window_bounds = array<i64: 32, 1>}, {pipeline_mode = #tpu.pipeline_mode<synchronous>, transform_indices = @transform_3, window_bounds = array<i64: 2, 32, 32>}, {pipeline_mode = #tpu.pipeline_mode<synchronous>, transform_indices = @transform_4, window_bounds = array<i64: 2, 32, 1>}, {pipeline_mode = #tpu.pipeline_mode<synchronous>, transform_indices = @transform_5, window_bounds = array<i64: 2, 32, 32>}, {pipeline_mode = #tpu.pipeline_mode<synchronous>, transform_indices = @transform_6, window_bounds = array<i64: 2, 32, 1>}, {pipeline_mode = #tpu.pipeline_mode<synchronous>, transform_indices = @transform_7, window_bounds = array<i64: 4, 32>}, {pipeline_mode = #tpu.pipeline_mode<synchronous>, transform_indices = @transform_8, window_bounds = array<i64: 4, 1>}, {transform_indices = @transform_9, window_bounds = array<i64: 1, 4, 512>}]} {
    %c0 = arith.constant 0 : index
    %c0_0 = arith.constant 0 : index
    %c0_1 = arith.constant 0 : index
    %0 = vector.load %arg2[%c0, %c0_0, %c0_1] : memref<1x4x512xf32, #tpu.memory_space<vmem>>, vector<1x4x512xf32>
    %1 = vector.shape_cast %0 : vector<1x4x512xf32> to vector<4x512xf32>
    %c0_2 = arith.constant 0 : index
    %c0_3 = arith.constant 0 : index
    %2 = vector.load %arg3[%c0_2, %c0_3] : memref<32x4xf32, #tpu.memory_space<vmem>>, vector<32x4xf32>
    %cst = arith.constant dense<0.000000e+00> : vector<32x512xf32>
    %3 = tpu.matmul %2, %1, %cst {dimension_numbers = #tpu.dot_dimension_numbers<[1], [0], [0], [1], [0, 0, 1, 1], [], []>} : vector<32x4xf32>, vector<4x512xf32>, vector<32x512xf32> -> vector<32x512xf32>
    %c0_4 = arith.constant 0 : index
    %c0_5 = arith.constant 0 : index
    %4 = vector.load %arg4[%c0_4, %c0_5] : memref<32x1xf32, #tpu.memory_space<vmem>>, vector<32x1xf32>
    %5 = vector.broadcast %4 : vector<32x1xf32> to vector<32x512xf32>
    %6 = arith.addf %3, %5 : vector<32x512xf32>
    %c0_6 = arith.constant 0 : index
    %c0_7 = arith.constant 0 : index
    %c0_8 = arith.constant 0 : index
    %7 = vector.load %arg5[%c0_6, %c0_7, %c0_8] : memref<2x32x32xf32, #tpu.memory_space<vmem>>, vector<1x32x32xf32>
    %8 = vector.shape_cast %7 : vector<1x32x32xf32> to vector<32x32xf32>
    %c0_9 = arith.constant 0 : index
    %c0_10 = arith.constant 0 : index
    %c0_11 = arith.constant 0 : index
    %9 = vector.load %arg6[%c0_9, %c0_10, %c0_11] : memref<2x32x1xf32, #tpu.memory_space<vmem>>, vector<1x32x1xf32>
    %10 = vector.shape_cast %9 : vector<1x32x1xf32> to vector<32x1xf32>
    %c0_12 = arith.constant 0 : index
    %c0_13 = arith.constant 0 : index
    %c0_14 = arith.constant 0 : index
    %11 = vector.load %arg7[%c0_12, %c0_13, %c0_14] : memref<2x32x32xf32, #tpu.memory_space<vmem>>, vector<1x32x32xf32>
    %12 = vector.shape_cast %11 : vector<1x32x32xf32> to vector<32x32xf32>
    %c0_15 = arith.constant 0 : index
    %c0_16 = arith.constant 0 : index
    %c0_17 = arith.constant 0 : index
    %13 = vector.load %arg8[%c0_15, %c0_16, %c0_17] : memref<2x32x1xf32, #tpu.memory_space<vmem>>, vector<1x32x1xf32>
    %14 = vector.shape_cast %13 : vector<1x32x1xf32> to vector<32x1xf32>
    %cst_18 = arith.constant 0.000000e+00 : f32
    %15 = vector.broadcast %cst_18 : f32 to vector<32x512xf32>
    %16 = arith.maximumf %6, %15 : vector<32x512xf32>
    %cst_19 = arith.constant dense<0.000000e+00> : vector<32x512xf32>
    %17 = tpu.matmul %8, %16, %cst_19 {dimension_numbers = #tpu.dot_dimension_numbers<[1], [0], [0], [1], [0, 0, 1, 1], [], []>} : vector<32x32xf32>, vector<32x512xf32>, vector<32x512xf32> -> vector<32x512xf32>
    %18 = vector.broadcast %10 : vector<32x1xf32> to vector<32x512xf32>
    %19 = arith.addf %17, %18 : vector<32x512xf32>
    %cst_20 = arith.constant 0.000000e+00 : f32
    %20 = vector.broadcast %cst_20 : f32 to vector<32x512xf32>
    %21 = arith.maximumf %19, %20 : vector<32x512xf32>
    %cst_21 = arith.constant dense<0.000000e+00> : vector<32x512xf32>
    %22 = tpu.matmul %12, %21, %cst_21 {dimension_numbers = #tpu.dot_dimension_numbers<[1], [0], [0], [1], [0, 0, 1, 1], [], []>} : vector<32x32xf32>, vector<32x512xf32>, vector<32x512xf32> -> vector<32x512xf32>
    %23 = vector.broadcast %14 : vector<32x1xf32> to vector<32x512xf32>
    %24 = arith.addf %22, %23 : vector<32x512xf32>
    %25 = arith.addf %6, %24 : vector<32x512xf32>
    %c1 = arith.constant 1 : index
    %c0_22 = arith.constant 0 : index
    %c0_23 = arith.constant 0 : index
    %26 = vector.load %arg5[%c1, %c0_22, %c0_23] : memref<2x32x32xf32, #tpu.memory_space<vmem>>, vector<1x32x32xf32>
    %27 = vector.shape_cast %26 : vector<1x32x32xf32> to vector<32x32xf32>
    %c1_24 = arith.constant 1 : index
    %c0_25 = arith.constant 0 : index
    %c0_26 = arith.constant 0 : index
    %28 = vector.load %arg6[%c1_24, %c0_25, %c0_26] : memref<2x32x1xf32, #tpu.memory_space<vmem>>, vector<1x32x1xf32>
    %29 = vector.shape_cast %28 : vector<1x32x1xf32> to vector<32x1xf32>
    %c1_27 = arith.constant 1 : index
    %c0_28 = arith.constant 0 : index
    %c0_29 = arith.constant 0 : index
    %30 = vector.load %arg7[%c1_27, %c0_28, %c0_29] : memref<2x32x32xf32, #tpu.memory_space<vmem>>, vector<1x32x32xf32>
    %31 = vector.shape_cast %30 : vector<1x32x32xf32> to vector<32x32xf32>
    %c1_30 = arith.constant 1 : index
    %c0_31 = arith.constant 0 : index
    %c0_32 = arith.constant 0 : index
    %32 = vector.load %arg8[%c1_30, %c0_31, %c0_32] : memref<2x32x1xf32, #tpu.memory_space<vmem>>, vector<1x32x1xf32>
    %33 = vector.shape_cast %32 : vector<1x32x1xf32> to vector<32x1xf32>
    %cst_33 = arith.constant 0.000000e+00 : f32
    %34 = vector.broadcast %cst_33 : f32 to vector<32x512xf32>
    %35 = arith.maximumf %25, %34 : vector<32x512xf32>
    %cst_34 = arith.constant dense<0.000000e+00> : vector<32x512xf32>
    %36 = tpu.matmul %27, %35, %cst_34 {dimension_numbers = #tpu.dot_dimension_numbers<[1], [0], [0], [1], [0, 0, 1, 1], [], []>} : vector<32x32xf32>, vector<32x512xf32>, vector<32x512xf32> -> vector<32x512xf32>
    %37 = vector.broadcast %29 : vector<32x1xf32> to vector<32x512xf32>
    %38 = arith.addf %36, %37 : vector<32x512xf32>
    %cst_35 = arith.constant 0.000000e+00 : f32
    %39 = vector.broadcast %cst_35 : f32 to vector<32x512xf32>
    %40 = arith.maximumf %38, %39 : vector<32x512xf32>
    %cst_36 = arith.constant dense<0.000000e+00> : vector<32x512xf32>
    %41 = tpu.matmul %31, %40, %cst_36 {dimension_numbers = #tpu.dot_dimension_numbers<[1], [0], [0], [1], [0, 0, 1, 1], [], []>} : vector<32x32xf32>, vector<32x512xf32>, vector<32x512xf32> -> vector<32x512xf32>
    %42 = vector.broadcast %33 : vector<32x1xf32> to vector<32x512xf32>
    %43 = arith.addf %41, %42 : vector<32x512xf32>
    %44 = arith.addf %25, %43 : vector<32x512xf32>
    %c0_37 = arith.constant 0 : index
    %c0_38 = arith.constant 0 : index
    %45 = vector.load %arg9[%c0_37, %c0_38] : memref<4x32xf32, #tpu.memory_space<vmem>>, vector<4x32xf32>
    %cst_39 = arith.constant 0.000000e+00 : f32
    %46 = vector.broadcast %cst_39 : f32 to vector<32x512xf32>
    %47 = arith.maximumf %44, %46 : vector<32x512xf32>
    %cst_40 = arith.constant dense<0.000000e+00> : vector<4x512xf32>
    %48 = tpu.matmul %45, %47, %cst_40 {dimension_numbers = #tpu.dot_dimension_numbers<[1], [0], [0], [1], [0, 0, 1, 1], [], []>} : vector<4x32xf32>, vector<32x512xf32>, vector<4x512xf32> -> vector<4x512xf32>
    %c0_41 = arith.constant 0 : index
    %c0_42 = arith.constant 0 : index
    %49 = vector.load %arg10[%c0_41, %c0_42] : memref<4x1xf32, #tpu.memory_space<vmem>>, vector<4x1xf32>
    %50 = vector.broadcast %49 : vector<4x1xf32> to vector<4x512xf32>
    %51 = arith.addf %48, %50 : vector<4x512xf32>
    %c0_43 = arith.constant 0 : index
    %c0_44 = arith.constant 0 : index
    %c0_45 = arith.constant 0 : index
    %52 = vector.load %arg11[%c0_43, %c0_44, %c0_45] : memref<1x4x512xf32, #tpu.memory_space<vmem>>, vector<1x4x512xf32>
    %53 = vector.shape_cast %52 : vector<1x4x512xf32> to vector<4x512xf32>
    %54 = vector.shape_cast %51 : vector<4x512xf32> to vector<1x4x512xf32>
    tpu.vector_store %arg11[%c0_43, %c0_44, %c0_45], %54 {strides = array<i32>} : memref<1x4x512xf32, #tpu.memory_space<vmem>>, vector<1x4x512xf32>,
    return
  }
  func.func @transform_0(%arg0: i32, %arg1: i32) -> (i32, i32, i32) {
    %c0_i32 = arith.constant 0 : i32
    %c0_i32_0 = arith.constant 0 : i32
    return %arg0, %c0_i32, %arg1 : i32, i32, i32
  }
  func.func @transform_1(%arg0: i32, %arg1: i32) -> (i32, i32) {
    %c0_i32 = arith.constant 0 : i32
    %c0_i32_0 = arith.constant 0 : i32
    %c0_i32_1 = arith.constant 0 : i32
    return %c0_i32, %c0_i32_0 : i32, i32
  }
  func.func @transform_2(%arg0: i32, %arg1: i32) -> (i32, i32) {
    %c0_i32 = arith.constant 0 : i32
    %c0_i32_0 = arith.constant 0 : i32
    %c0_i32_1 = arith.constant 0 : i32
    return %c0_i32, %c0_i32_0 : i32, i32
  }
  func.func @transform_3(%arg0: i32, %arg1: i32) -> (i32, i32, i32) {
    %c0_i32 = arith.constant 0 : i32
    %c0_i32_0 = arith.constant 0 : i32
    %c0_i32_1 = arith.constant 0 : i32
    %c0_i32_2 = arith.constant 0 : i32
    return %c0_i32, %c0_i32_0, %c0_i32_1 : i32, i32, i32
  }
  func.func @transform_4(%arg0: i32, %arg1: i32) -> (i32, i32, i32) {
    %c0_i32 = arith.constant 0 : i32
    %c0_i32_0 = arith.constant 0 : i32
    %c0_i32_1 = arith.constant 0 : i32
    %c0_i32_2 = arith.constant 0 : i32
    return %c0_i32, %c0_i32_0, %c0_i32_1 : i32, i32, i32
  }
  func.func @transform_5(%arg0: i32, %arg1: i32) -> (i32, i32, i32) {
    %c0_i32 = arith.constant 0 : i32
    %c0_i32_0 = arith.constant 0 : i32
    %c0_i32_1 = arith.constant 0 : i32
    %c0_i32_2 = arith.constant 0 : i32
    return %c0_i32, %c0_i32_0, %c0_i32_1 : i32, i32, i32
  }
  func.func @transform_6(%arg0: i32, %arg1: i32) -> (i32, i32, i32) {
    %c0_i32 = arith.constant 0 : i32
    %c0_i32_0 = arith.constant 0 : i32
    %c0_i32_1 = arith.constant 0 : i32
    %c0_i32_2 = arith.constant 0 : i32
    return %c0_i32, %c0_i32_0, %c0_i32_1 : i32, i32, i32
  }
  func.func @transform_7(%arg0: i32, %arg1: i32) -> (i32, i32) {
    %c0_i32 = arith.constant 0 : i32
    %c0_i32_0 = arith.constant 0 : i32
    %c0_i32_1 = arith.constant 0 : i32
    return %c0_i32, %c0_i32_0 : i32, i32
  }
  func.func @transform_8(%arg0: i32, %arg1: i32) -> (i32, i32) {
    %c0_i32 = arith.constant 0 : i32
    %c0_i32_0 = arith.constant 0 : i32
    %c0_i32_1 = arith.constant 0 : i32
    return %c0_i32, %c0_i32_0 : i32, i32
  }
  func.func @transform_9(%arg0: i32, %arg1: i32) -> (i32, i32, i32) {
    %c0_i32 = arith.constant 0 : i32
    %c0_i32_0 = arith.constant 0 : i32
    return %arg0, %c0_i32, %arg1 : i32, i32, i32
  }
}

</mosaic_0001>

<bundles_post_ra>
// kernel: tpu_custom_call.1
= control target key start
LH: loop header
LB: loop body
LE: loop exit
PB: predicated region body
PF: predicated region fallthrough
CT: control target
= control target key end

     0   :  { %14 = vsyncpa [#allocation3], 0  ;;  %s2641_s0 = inlined_call_operand.vmem [shape: f32[2,4,512], index: 0, kind: input, shape index: {}]   ;;  %s2642_s1 = inlined_call_operand.vmem [shape: f32[32,4], index: 1, kind: input, shape index: {}]   ;;  %s2643_s2 = inlined_call_operand.vmem [shape: f32[32,1], index: 2, kind: input, shape index: {}]   ;;  %s2644_s3 = inlined_call_operand.vmem [shape: f32[2,32,32], index: 3, kind: input, shape index: {}]   ;;  %s2645_s4 = inlined_call_operand.vmem [shape: f32[2,32,1], index: 4, kind: input, shape index: {}]   ;;  %s2646_s5 = inlined_call_operand.vmem [shape: f32[2,32,32], index: 5, kind: input, shape index: {}]   ;;  %s2647_s6 = inlined_call_operand.vmem [shape: f32[2,32,1], index: 6, kind: input, shape index: {}]   ;;  %s2648_s7 = inlined_call_operand.vmem [shape: f32[4,32], index: 7, kind: input, shape index: {}]   ;;  %s2649_s8 = inlined_call_operand.vmem [shape: f32[4,1], index: 8, kind: input, shape index: {}]   ;;  %s2650_s9 = inlined_call_operand.hbm [shape: f32[2,4,512], index: 9, kind: output, shape index: {}]  }
   0x1   :  { %16 = vsyncpa [#allocation3 + $0x1], 0  ;;  %s2191_s30 = smov 0   ;;  %s2193_s10 = smov 0  }
   0x2   :  { %s2195_s11 = smov 0   ;;  %s2197_s12 = smov 0  }
   0x3   :  { %s2199_s13 = smov 0   ;;  %s2201_s14 = smov 0  }
   0x4 LB: > { %s1840_s15 = sadd.s32 4294967295, %s2136_s14   ;;  %s1841_s16 = sadd.s32 4294967294, %s2136_s14   ;;  %s2136_s14 = sphi %s2201_s14, %s22_s14   ;;  %s2132_s13 = sphi %s2199_s13, %s2657_s13   ;;  %s2128_s12 = sphi %s2197_s12, %s2656_s12   ;;  %s2124_s11 = sphi %s2195_s11, %s2655_s11   ;;  %s2120_s10 = sphi %s2193_s10, %s2654_s10   ;;  %s2116_s30 = sphi %s2191_s30, %s2653_s30  }
   0x5   : > { %s34_s17 = sadd.s32 1, %s2132_s13  ;;  %s239_s18 = sadd.s32 1, %s2124_s11 }
   0x6   : > { %p36_p0 = scmp.ge.s32.totalorder %s34_s17, 2  ;;  %p249_p1 = scmp.ne.s32.totalorder %s2124_s11, %s2120_s10 }
   0x7   : > { %p250_p2 = scmp.eq.s32.totalorder %s1840_s15, 1  ;;  %p255_p3 = scmp.ne.s32.totalorder %s2120_s10, %s2116_s30 }
   0x8   : > { %s2659_s17 = smov (%p36_p0, %s34_s17), 0  ;;  %p256_p5 = scmp.eq.s32.totalorder %s1841_s16, 1 }
   0x9   : > { %p2231_p4 = por %p250_p2, %p249_p1  ;;  %s234_s20 = ssub.s32 %s2132_s13, %s2659_s17 }
   0xa   : > { %p1844_p6 = scmp.ge.s32.totalorder %s2136_s14, 1  ;;  %p237_p7 = scmp.eq.s32.totalorder %s234_s20, 0 }
   0xb   : > { %p2238_p8 = por %p256_p5, %p255_p3  ;;  %p311_p9 = scmp.lt.s32.totalorder %s2136_s14, 3 }
   0xc   : > { %s2244_s22 = scalar_select %p237_p7, %s2124_s11, %s239_s18  }
   0xd   : > { %p312_p10 = pnand %p1844_p6, %p311_p9 }
   0xe   : > { %p352_p11 = scmp.lt.s32.totalorder (!%p312_p10), %s2128_s12, 1  ;;  %v2138_v0 = vmov (!%p312_p10), 0.0   ;;  %v368_v1 = vld [vmem:[%s2643_s2] sm:$0xff] (!%p312_p10)  ;;  %v2139_v2 = vmov (!%p312_p10), 0   ;;  %v370_v3 = vld [vmem:[%s2643_s2 + $0x10] sm:$0xff] (!%p312_p10)  ;;  %v369_v4 = vld [vmem:[%s2643_s2 + $0x8] sm:$0xff] (!%p312_p10) }
   0xf   : > { %315 = sbr.rel (%p312_p10) target bundleno = 1441 (0x5a1), region = 56  ;;  %482 = vmatprep.mubr.f32.mxu0 (!%p312_p10), %v2138_v0  ;;  %571 = vmatprep.mubr.f32.mxu1 (!%p312_p10), %v2138_v0  ;;  %v371_v5 = vld [vmem:[%s2643_s2 + $0x18] sm:$0xff] (!%p312_p10)  ;;  %vm409_vm0 = vcmask (!%p312_p10), 1043456   ;;  %v364_v10 = vld [vmem:[%s2642_s1] sm:$0xff] (!%p312_p10)  ;;  %vm396_vm1 = vcmask (!%p312_p10), 31744   ;;  %v601_v12 = vld [vmem:[%s2645_s4 + $0x8] sm:$0xff] (!%p312_p10) }
  0x10   : > { %2054 = vset.pattern.permute.xlu0 (!%p312_p10), %v2139_v2  ;;  %2055 = vset.pattern.permute.xlu1 (!%p312_p10), %v2139_v2  ;;  %v600_v11 = vld [vmem:[%s2645_s4] sm:$0xff] (!%p312_p10)  ;;  %v365_v13 = vld [vmem:[%s2642_s1 + $0x8] sm:$0xff] (!%p312_p10)  ;;  %v602_v14 = vld [vmem:[%s2645_s4 + $0x10] sm:$0xff] (!%p312_p10)  ;;  %vm648_vm2 = vcmask (!%p312_p10), 261120   ;;  %s1916_s26 = sshll.u32 (!%p312_p10), %s2128_s12, 8  ;;  %s2140_s20 = smov (!%p312_p10), [#allocation2]  }
  0x11   : > { %374 = vperm.xlu0 (!%p312_p10), %2054, %v368_v1   ;;  %384 = vperm.xlu1 (!%p312_p10), %2055, %v370_v3   ;;  %v603_v15 = vld [vmem:[%s2645_s4 + $0x18] sm:$0xff] (!%p312_p10)  ;;  %v366_v16 = vld [vmem:[%s2642_s1 + $0x10] sm:$0xff] (!%p312_p10)  ;;  %v608_v17 = vld [vmem:[%s2647_s6] sm:$0xff] (!%p312_p10)  ;;  %s2594_s16 = scalar_lea.hbm (!%p312_p10), %s2650_s9, %s1916_s26  ;;  %s2062_s23 = sshll.u32 (!%p312_p10), %s2140_s20, 4  ;;  %s2063_s23 = int_to_ptr.vmem [resolvable:$false] %s2062_s23 }
  0x12   : > { %v609_v18 = vld [vmem:[%s2647_s6 + $0x8] sm:$0xff] (!%p312_p10)  ;;  %v367_v19 = vld [vmem:[%s2642_s1 + $0x18] sm:$0xff] (!%p312_p10)  ;;  %v610_v20 = vld [vmem:[%s2647_s6 + $0x10] sm:$0xff] (!%p312_p10) }
  0x13   : > { %v611_v21 = vld [vmem:[%s2647_s6 + $0x18] sm:$0xff] (!%p312_p10)  ;;  %v1880_v22 = vld [vmem:[%s2645_s4 + $0x20] sm:$0xff] (!%p312_p10)  ;;  %v1881_v23 = vld [vmem:[%s2645_s4 + $0x28] sm:$0xff] (!%p312_p10) }
  0x14   : > { %v1882_v24 = vld [vmem:[%s2645_s4 + $0x30] sm:$0xff] (!%p312_p10)  ;;  %v1883_v25 = vld [vmem:[%s2645_s4 + $0x38] sm:$0xff] (!%p312_p10)  ;;  %v1888_v26 = vld [vmem:[%s2647_s6 + $0x20] sm:$0xff] (!%p312_p10) }
  0x15   : > { %379 = vperm.xlu0 (!%p312_p10), %2054, %v369_v4   ;;  %389 = vperm.xlu1 (!%p312_p10), %2055, %v371_v5   ;;  %v1889_v27 = vld [vmem:[%s2647_s6 + $0x28] sm:$0xff] (!%p312_p10)  ;;  %v1890_v28 = vld [vmem:[%s2647_s6 + $0x30] sm:$0xff] (!%p312_p10)  ;;  %v1891_v29 = vld [vmem:[%s2647_s6 + $0x38] sm:$0xff] (!%p312_p10) }
  0x16   : > { %s353_s25 = scalar_select %p352_p11, %s2128_s12, 1  ;;  %v1586_v30 = vld [vmem:[%s2649_s8] sm:$0xf] }
  0x18   : > { %s1915_s28 = sshll.u32 %s353_s25, 4 }
  0x19   : > { %s359_s24 = scalar_lea.vmem %s2641_s0, %s1915_s28  ;;  %630 = vperm.xlu0 %2054, %v600_v11   ;;  %635 = vperm.xlu1 %2055, %v601_v12  }
  0x1a   : > { %v362_v6 = vld [vmem:[%s359_s24] sm:$0xff]  ;;  %v363_v7 = vld [vmem:[%s359_s24 + $0x8] sm:$0xff]  ;;  %s348_s24 = sand.u32 1, %s2120_s10  }
  0x1b   : > { %v394_v8 = vcombine.high %v362_v6, %v362_v6  ;;  %v395_v9 = vcombine.high %v363_v7, %v363_v7  ;;  %s1845_s25 = sshll.u32 %s348_s24, 4  ;;  %s1748_s18 = scalar_lea.sflag [#allocation3], %s348_s24 }
  0x1c   : > { %s350_s27 = scalar_lea.vmem [#allocation2], %s1845_s25  ;;  %s2064_s25 = scalar_lea.vmem %s2063_s23, 512 }
  0x1d   : > { %1848 = vmatprep.subr.msk.mxu0 %vm409_vm0, %v394_v8  ;;  %1854 = vmatprep.subr.msk.mxu1 %vm409_vm0, %v395_v9  ;;  %s1764_s29 = sshll.u32 %s350_s27, 4  ;;  %s2596_s29 = int_to_ptr.vmem [resolvable:$true] %s1764_s29 }
  0x1e   : > { %1849 = vmatpush1.msk.msra.mxu0 %vm409_vm0, %v362_v6  ;;  %1855 = vmatpush1.msk.msra.mxu1 %vm409_vm0, %v363_v7  ;;  %s2058_s12 = scalar_lea.vmem %s2596_s29, 256  ;;  %p2065_p1 = scmp.lt.s32.totalorder %s2596_s29, %s2063_s23 }
  0x1f   : > { %1850 = vmatmul.mubr.msk.f32.vlgmr.msra.gmra.mrb[0].mxu0 %vm396_vm1, %v364_v10  ;;  %1856 = vmatmul.mubr.msk.f32.vlgmr.msra.gmra.mrb[0].mxu1 %vm396_vm1, %v364_v10  ;;  %p2059_p12 = scmp.ne.s32.totalorder %s2596_s29, %s2058_s12  ;;  %p2066_p2 = scmp.lt.s32.totalorder %s2064_s25, %s2058_s12 }
  0x20   : > { %488 = vmatprep.mubr.f32.mxu0 %v2138_v0  ;;  %577 = vmatprep.mubr.f32.mxu1 %v2138_v0 }
  0x21   : > { %640 = vperm.xlu0 %2054, %v602_v14   ;;  %645 = vperm.xlu1 %2055, %v603_v15   ;;  %p2060_p13 = pnand %p2059_p12, %p2231_p4  ;;  %p2067_p3 = por %p2066_p2, %p2065_p1 }
  0x23   : > { %1851 = vmatmul.mubr.msk.f32.gmra.mrb[2].mxu0 %vm396_vm1, %v365_v13  ;;  %1857 = vmatmul.mubr.msk.f32.gmra.mrb[2].mxu1 %vm396_vm1, %v365_v13  ;;  %p2061_p0 = pneg %p2060_p13 }
  0x24   : > { %494 = vmatprep.mubr.f32.mxu0 %v2138_v0  ;;  %583 = vmatprep.mubr.f32.mxu1 %v2138_v0 }
  0x25   : > { %857 = vperm.xlu0 %2054, %v608_v17   ;;  %862 = vperm.xlu1 %2055, %v609_v18   ;;  %p2068_p5 = pnand %p2067_p3, %p2061_p0 }
  0x27   : > { %1852 = vmatmul.mubr.msk.f32.gmra.mrb[4].mxu0 %vm396_vm1, %v366_v16  ;;  %1858 = vmatmul.mubr.msk.f32.gmra.mrb[4].mxu1 %vm396_vm1, %v366_v16 }
  0x28   : > { %500 = vmatprep.mubr.f32.mxu0 %v2138_v0  ;;  %589 = vmatprep.mubr.f32.mxu1 %v2138_v0 }
  0x29   : > { %867 = vperm.xlu0 %2054, %v610_v20   ;;  %872 = vperm.xlu1 %2055, %v611_v21  }
  0x2b   : > { %1853 = vmatmul.mubr.msk.f32.gmra.mrb[6].mxu0 %vm396_vm1, %v367_v19  ;;  %1859 = vmatmul.mubr.msk.f32.gmra.mrb[6].mxu1 %vm396_vm1, %v367_v19 }
  0x2c   : > { %725 = vmatprep.mubr.f32.mxu0 %v2138_v0  ;;  %814 = vmatprep.mubr.f32.mxu1 %v2138_v0 }
  0x2d   : > { %1119 = vperm.xlu0 %2054, %v1880_v22   ;;  %1124 = vperm.xlu1 %2055, %v1881_v23  }
  0x31   : > { %1129 = vperm.xlu0 %2054, %v1882_v24   ;;  %1134 = vperm.xlu1 %2055, %v1883_v25  }
  0x35   : > { %1345 = vperm.xlu0 %2054, %v1888_v26   ;;  %1350 = vperm.xlu1 %2055, %v1889_v27  }
  0x39   : > { %1355 = vperm.xlu0 %2054, %v1890_v28   ;;  %1360 = vperm.xlu1 %2055, %v1891_v29   ;;  %v596_v28 = vld [vmem:[%s2644_s3] sm:$0xff]  ;;  %v597_v29 = vld [vmem:[%s2644_s3 + $0x8] sm:$0xff] }
  0x3d   : > { %1589 = vperm.xlu0 %2054, %v1586_v30   ;;  %v598_v30 = vld [vmem:[%s2644_s3 + $0x10] sm:$0xff] }
  0x90   : > { %v375_v31 = vpop.permute.xlu0 %374  ;;  %v385_v37 = vpop.permute.xlu1 %384 }
  0x94   : > { %v380_v36 = vpop.permute.xlu0 %379  ;;  %v390_v1 = vpop.permute.xlu1 %389 }
  0xf2   : > { %v484_v32 = vpop.f32.mrb[0].mxu0  ;;  %v573_v33 = vpop.f32.mrb[0].mxu1 }
  0xf3   : > { %v486_v34 = vpop.f32.mrb[1].mxu0  ;;  %v575_v35 = vpop.f32.mrb[1].mxu1  ;;  %v2348_v42 = vadd.f32 %v484_v32, %v375_v31  ;;  %v2350_v43 = vadd.f32 %v573_v33, %v375_v31 }
  0xf4   : > { %v2344_v38 = vadd.f32 %v486_v34, %v375_v31  ;;  %v2346_v39 = vadd.f32 %v575_v35, %v375_v31  ;;  %v599_v31 = vld [vmem:[%s2644_s3 + $0x18] sm:$0xff] }
  0xf5   : > { %v612_v58 = vmax.f32 %v2348_v42, 0.0  ;;  %v614_v59 = vmax.f32 %v2350_v43, 0.0 }
  0xf6   : > { %v490_v40 = vpop.f32.mrb[2].mxu0  ;;  %v579_v41 = vpop.f32.mrb[2].mxu1  ;;  %v613_v52 = vmax.f32 %v2344_v38, 0.0  ;;  %v615_v53 = vmax.f32 %v2346_v39, 0.0 }
  0xf7   : > { %v2352_v44 = vadd.f32 %v490_v40, %v380_v36  ;;  %v2354_v45 = vadd.f32 %v579_v41, %v380_v36  ;;  %v492_v46 = vpop.f32.mrb[3].mxu0  ;;  %v581_v47 = vpop.f32.mrb[3].mxu1 }
  0xf8   : > { %v2356_v48 = vadd.f32 %v492_v46, %v380_v36  ;;  %v2358_v49 = vadd.f32 %v581_v47, %v380_v36  ;;  %v631_v36 = vpop.permute.xlu0 %630 }
  0xf9   : > { %v616_v50 = vmax.f32 %v2352_v44, 0.0  ;;  %v618_v51 = vmax.f32 %v2354_v45, 0.0 }
  0xfa   : > { %v617_v54 = vmax.f32 %v2356_v48, 0.0  ;;  %v619_v55 = vmax.f32 %v2358_v49, 0.0  ;;  %v496_v56 = vpop.f32.mrb[4].mxu0  ;;  %v585_v57 = vpop.f32.mrb[4].mxu1 }
  0xfb   : > { %v498_v60 = vpop.f32.mrb[5].mxu0  ;;  %v587_v61 = vpop.f32.mrb[5].mxu1  ;;  %v1919_v2 = vpack.c.bf16 %v616_v50, %v612_v58  ;;  %v1927_v3 = vpack.c.bf16 %v618_v51, %v614_v59  ;;  %v2368_v4 = vadd.f32 %v496_v56, %v385_v37  ;;  %v2374_v9 = vadd.f32 %v585_v57, %v385_v37 }
  0xfc   : > { %v1917_v62 = vpack.c.bf16 %v617_v54, %v613_v52  ;;  %v1925_v63 = vpack.c.bf16 %v619_v55, %v615_v53  ;;  %v2370_v5 = vadd.f32 %v498_v60, %v385_v37  ;;  %v2372_v6 = vadd.f32 %v587_v61, %v385_v37  ;;  %v636_v37 = vpop.permute.xlu1 %635 }
  0xfd   : > { %v620_v22 = vmax.f32 %v2368_v4, 0.0  ;;  %v622_v23 = vmax.f32 %v2374_v9, 0.0 }
  0xfe   : > { %v502_v7 = vpop.f32.mrb[6].mxu0  ;;  %v591_v8 = vpop.f32.mrb[6].mxu1  ;;  %1918 = vmatprep.subr.bf16.mxu0 %v1917_v62  ;;  %1926 = vmatprep.subr.bf16.mxu1 %v1925_v63  ;;  %v621_v18 = vmax.f32 %v2370_v5, 0.0  ;;  %v623_v19 = vmax.f32 %v2372_v6, 0.0 }
  0xff   : > { %v2376_v10 = vadd.f32 %v502_v7, %v390_v1  ;;  %v2378_v11 = vadd.f32 %v591_v8, %v390_v1  ;;  %v504_v12 = vpop.f32.mrb[7].mxu0  ;;  %v593_v13 = vpop.f32.mrb[7].mxu1  ;;  %1920 = vmatpush1.bf16.msra.mxu0 %v1919_v2  ;;  %1928 = vmatpush1.bf16.msra.mxu1 %v1927_v3 }
 0x100   : > { %v2380_v14 = vadd.f32 %v504_v12, %v390_v1  ;;  %v2382_v15 = vadd.f32 %v593_v13, %v390_v1 }
 0x101   : > { %v624_v16 = vmax.f32 %v2376_v10, 0.0  ;;  %v626_v17 = vmax.f32 %v2378_v11, 0.0 }
 0x102   : > { %v625_v20 = vmax.f32 %v2380_v14, 0.0  ;;  %v627_v21 = vmax.f32 %v2382_v15, 0.0 }
 0x103   : > { %v1923_v26 = vpack.c.bf16 %v624_v16, %v620_v22  ;;  %v1931_v27 = vpack.c.bf16 %v626_v17, %v622_v23  ;;  %v641_v17 = vpop.permute.xlu0 %640 }
 0x104   : > { %v1921_v24 = vpack.c.bf16 %v625_v20, %v621_v18  ;;  %v1929_v25 = vpack.c.bf16 %v627_v21, %v623_v19  ;;  %v646_v20 = vpop.permute.xlu1 %645 }
 0x106   : > { %1922 = vmatprep.subr.bf16.mxu0 %v1921_v24  ;;  %1930 = vmatprep.subr.bf16.mxu1 %v1929_v25 }
 0x107   : > { %1924 = vmatpush1.bf16.msra.mxu0 %v1923_v26  ;;  %1932 = vmatpush1.bf16.msra.mxu1 %v1931_v27 }
 0x10a   : > { %1860 = vmatmul.mubr.msk.f32.vlgmr.msra.gmra.mrb[8].mxu0 %vm648_vm2, %v596_v28  ;;  %1864 = vmatmul.mubr.msk.f32.vlgmr.msra.gmra.mrb[8].mxu1 %vm648_vm2, %v596_v28 }
 0x10b   : > { %731 = vmatprep.mubr.f32.mxu0 %v2138_v0  ;;  %820 = vmatprep.mubr.f32.mxu1 %v2138_v0 }
 0x10e   : > { %1861 = vmatmul.mubr.msk.f32.gmra.mrb[10].mxu0 %vm648_vm2, %v597_v29  ;;  %1865 = vmatmul.mubr.msk.f32.gmra.mrb[10].mxu1 %vm648_vm2, %v597_v29 }
 0x10f   : > { %737 = vmatprep.mubr.f32.mxu0 %v2138_v0  ;;  %826 = vmatprep.mubr.f32.mxu1 %v2138_v0 }
 0x112   : > { %1862 = vmatmul.mubr.msk.f32.gmra.mrb[12].mxu0 %vm648_vm2, %v598_v30  ;;  %1866 = vmatmul.mubr.msk.f32.gmra.mrb[12].mxu1 %vm648_vm2, %v598_v30 }
 0x113   : > { %743 = vmatprep.mubr.f32.mxu0 %v2138_v0  ;;  %832 = vmatprep.mubr.f32.mxu1 %v2138_v0 }
 0x116   : > { %1863 = vmatmul.mubr.msk.f32.gmra.mrb[14].mxu0 %vm648_vm2, %v599_v31  ;;  %1867 = vmatmul.mubr.msk.f32.gmra.mrb[14].mxu1 %vm648_vm2, %v599_v31 }
 0x117   : > { %951 = vmatprep.mubr.f32.mxu0 %v2138_v0  ;;  %1040 = vmatprep.mubr.f32.mxu1 %v2138_v0 }
 0x1dd   : > { %v727_v32 = vpop.f32.mrb[8].mxu0  ;;  %v816_v33 = vpop.f32.mrb[8].mxu1 }
 0x1de   : > { %v729_v34 = vpop.f32.mrb[9].mxu0  ;;  %v818_v35 = vpop.f32.mrb[9].mxu1  ;;  %v728_v40 = vadd.f32 %v727_v32, %v631_v36  ;;  %v817_v41 = vadd.f32 %v816_v33, %v631_v36 }
 0x1df   : > { %v730_v46 = vadd.f32 %v729_v34, %v631_v36  ;;  %v819_v47 = vadd.f32 %v818_v35, %v631_v36 }
 0x1e0   : > { %v839_v58 = vmax.f32 %v728_v40, 0.0  ;;  %v841_v59 = vmax.f32 %v817_v41, 0.0 }
 0x1e1   : > { %v733_v50 = vpop.f32.mrb[10].mxu0  ;;  %v822_v51 = vpop.f32.mrb[10].mxu1  ;;  %v840_v62 = vmax.f32 %v730_v46, 0.0  ;;  %v842_v63 = vmax.f32 %v819_v47, 0.0 }
 0x1e2   : > { %v734_v52 = vadd.f32 %v733_v50, %v636_v37  ;;  %v823_v53 = vadd.f32 %v822_v51, %v636_v37  ;;  %v735_v54 = vpop.f32.mrb[11].mxu0  ;;  %v824_v55 = vpop.f32.mrb[11].mxu1 }
 0x1e3   : > { %v736_v56 = vadd.f32 %v735_v54, %v636_v37  ;;  %v825_v57 = vadd.f32 %v824_v55, %v636_v37  ;;  %v605_v54 = vld [vmem:[%s2646_s5 + $0x8] sm:$0xff]  ;;  %v606_v55 = vld [vmem:[%s2646_s5 + $0x10] sm:$0xff] }
 0x1e4   : > { %v843_v60 = vmax.f32 %v734_v52, 0.0  ;;  %v845_v61 = vmax.f32 %v823_v53, 0.0  ;;  %v604_v53 = vld [vmem:[%s2646_s5] sm:$0xff] }
 0x1e5   : > { %v844_v1 = vmax.f32 %v736_v56, 0.0  ;;  %v846_v2 = vmax.f32 %v825_v57, 0.0  ;;  %v739_v3 = vpop.f32.mrb[12].mxu0  ;;  %v828_v7 = vpop.f32.mrb[12].mxu1  ;;  %v607_v56 = vld [vmem:[%s2646_s5 + $0x18] sm:$0xff] }
 0x1e6   : > { %v1935_v8 = vpack.c.bf16 %v843_v60, %v839_v58  ;;  %v1943_v12 = vpack.c.bf16 %v845_v61, %v841_v59  ;;  %v741_v13 = vpop.f32.mrb[13].mxu0  ;;  %v830_v16 = vpop.f32.mrb[13].mxu1  ;;  %v740_v21 = vadd.f32 %v739_v3, %v641_v17  ;;  %v829_v22 = vadd.f32 %v828_v7, %v641_v17 }
 0x1e7   : > { %v1933_v18 = vpack.c.bf16 %v844_v1, %v840_v62  ;;  %v1941_v19 = vpack.c.bf16 %v846_v2, %v842_v63  ;;  %v742_v23 = vadd.f32 %v741_v13, %v641_v17  ;;  %v831_v24 = vadd.f32 %v830_v16, %v641_v17  ;;  %v858_v57 = vpop.permute.xlu0 %857  ;;  %v863_v3 = vpop.permute.xlu1 %862 }
 0x1e8   : > { %v847_v33 = vmax.f32 %v740_v21, 0.0  ;;  %v849_v34 = vmax.f32 %v829_v22, 0.0 }
 0x1e9   : > { %v745_v25 = vpop.f32.mrb[14].mxu0  ;;  %v834_v26 = vpop.f32.mrb[14].mxu1  ;;  %1934 = vmatprep.subr.bf16.mxu0 %v1933_v18  ;;  %1942 = vmatprep.subr.bf16.mxu1 %v1941_v19  ;;  %v848_v37 = vmax.f32 %v742_v23, 0.0  ;;  %v850_v40 = vmax.f32 %v831_v24, 0.0 }
 0x1ea   : > { %v746_v27 = vadd.f32 %v745_v25, %v646_v20  ;;  %v835_v28 = vadd.f32 %v834_v26, %v646_v20  ;;  %v747_v29 = vpop.f32.mrb[15].mxu0  ;;  %v836_v30 = vpop.f32.mrb[15].mxu1  ;;  %1936 = vmatpush1.bf16.msra.mxu0 %v1935_v8  ;;  %1944 = vmatpush1.bf16.msra.mxu1 %v1943_v12 }
 0x1eb   : > { %v748_v31 = vadd.f32 %v747_v29, %v646_v20  ;;  %v837_v32 = vadd.f32 %v836_v30, %v646_v20  ;;  %v868_v24 = vpop.permute.xlu0 %867 }
 0x1ec   : > { %v851_v35 = vmax.f32 %v746_v27, 0.0  ;;  %v853_v36 = vmax.f32 %v835_v28, 0.0 }
 0x1ed   : > { %v852_v41 = vmax.f32 %v748_v31, 0.0  ;;  %v854_v46 = vmax.f32 %v837_v32, 0.0 }
 0x1ee   : > { %v1939_v47 = vpack.c.bf16 %v851_v35, %v847_v33  ;;  %v1947_v50 = vpack.c.bf16 %v853_v36, %v849_v34 }
 0x1ef   : > { %v1937_v51 = vpack.c.bf16 %v852_v41, %v848_v37  ;;  %v1945_v52 = vpack.c.bf16 %v854_v46, %v850_v40  ;;  %v873_v37 = vpop.permute.xlu1 %872 }
 0x1f1   : > { %1938 = vmatprep.subr.bf16.mxu0 %v1937_v51  ;;  %1946 = vmatprep.subr.bf16.mxu1 %v1945_v52 }
 0x1f2   : > { %1940 = vmatpush1.bf16.msra.mxu0 %v1939_v47  ;;  %1948 = vmatpush1.bf16.msra.mxu1 %v1947_v50 }
 0x1f5   : > { %1868 = vmatmul.mubr.msk.f32.vlgmr.msra.gmra.mrb[16].mxu0 %vm648_vm2, %v604_v53  ;;  %1872 = vmatmul.mubr.msk.f32.vlgmr.msra.gmra.mrb[16].mxu1 %vm648_vm2, %v604_v53 }
 0x1f6   : > { %957 = vmatprep.mubr.f32.mxu0 %v2138_v0  ;;  %1046 = vmatprep.mubr.f32.mxu1 %v2138_v0 }
 0x1f9   : > { %1869 = vmatmul.mubr.msk.f32.gmra.mrb[18].mxu0 %vm648_vm2, %v605_v54  ;;  %1873 = vmatmul.mubr.msk.f32.gmra.mrb[18].mxu1 %vm648_vm2, %v605_v54 }
 0x1fa   : > { %963 = vmatprep.mubr.f32.mxu0 %v2138_v0  ;;  %1052 = vmatprep.mubr.f32.mxu1 %v2138_v0 }
 0x1fd   : > { %1870 = vmatmul.mubr.msk.f32.gmra.mrb[20].mxu0 %vm648_vm2, %v606_v55  ;;  %1874 = vmatmul.mubr.msk.f32.gmra.mrb[20].mxu1 %vm648_vm2, %v606_v55 }
 0x1fe   : > { %969 = vmatprep.mubr.f32.mxu0 %v2138_v0  ;;  %1058 = vmatprep.mubr.f32.mxu1 %v2138_v0 }
 0x201   : > { %1871 = vmatmul.mubr.msk.f32.gmra.mrb[22].mxu0 %vm648_vm2, %v607_v56  ;;  %1875 = vmatmul.mubr.msk.f32.gmra.mrb[22].mxu1 %vm648_vm2, %v607_v56 }
 0x202   : > { %1213 = vmatprep.mubr.f32.mxu0 %v2138_v0  ;;  %1302 = vmatprep.mubr.f32.mxu1 %v2138_v0 }
 0x2c8   : > { %v953_v58 = vpop.f32.mrb[16].mxu0  ;;  %v1042_v59 = vpop.f32.mrb[16].mxu1 }
 0x2c9   : > { %v954_v60 = vadd.f32 %v953_v58, %v858_v57  ;;  %v1043_v61 = vadd.f32 %v1042_v59, %v858_v57  ;;  %v955_v62 = vpop.f32.mrb[17].mxu0  ;;  %v1044_v63 = vpop.f32.mrb[17].mxu1 }
 0x2ca   : > { %v956_v1 = vadd.f32 %v955_v62, %v858_v57  ;;  %v1045_v2 = vadd.f32 %v1044_v63, %v858_v57 }
 0x2cb   : > { %v2449_v7 = vadd.f32 %v954_v60, %v2348_v42  ;;  %v2452_v8 = vadd.f32 %v1043_v61, %v2350_v43 }
 0x2cc   : > { %v2455_v12 = vadd.f32 %v956_v1, %v2344_v38  ;;  %v959_v13 = vpop.f32.mrb[18].mxu0  ;;  %v1048_v16 = vpop.f32.mrb[18].mxu1  ;;  %v2458_v17 = vadd.f32 %v1045_v2, %v2346_v39 }
 0x2cd   : > { %v960_v18 = vadd.f32 %v959_v13, %v863_v3  ;;  %v1049_v19 = vadd.f32 %v1048_v16, %v863_v3  ;;  %v961_v20 = vpop.f32.mrb[19].mxu0  ;;  %v1050_v21 = vpop.f32.mrb[19].mxu1  ;;  %v1101_v42 = vmax.f32 %v2449_v7, 0.0  ;;  %v1103_v25 = vmax.f32 %v2452_v8, 0.0 }
 0x2ce   : > { %v962_v22 = vadd.f32 %v961_v20, %v863_v3  ;;  %v1051_v23 = vadd.f32 %v1050_v21, %v863_v3  ;;  %v1102_v39 = vmax.f32 %v2455_v12, 0.0  ;;  %v1104_v30 = vmax.f32 %v2458_v17, 0.0  ;;  %v1877_v20 = vld [vmem:[%s2644_s3 + $0x28] sm:$0xff]  ;;  %v1878_v21 = vld [vmem:[%s2644_s3 + $0x30] sm:$0xff] }
 0x2cf   : > { %v2462_v43 = vadd.f32 %v960_v18, %v2352_v44  ;;  %v2465_v38 = vadd.f32 %v1049_v19, %v2354_v45  ;;  %v1876_v19 = vld [vmem:[%s2644_s3 + $0x20] sm:$0xff] }
 0x2d0   : > { %v2470_v26 = vadd.f32 %v962_v22, %v2356_v48  ;;  %v2473_v27 = vadd.f32 %v1051_v23, %v2358_v49  ;;  %v965_v28 = vpop.f32.mrb[20].mxu0  ;;  %v1054_v29 = vpop.f32.mrb[20].mxu1  ;;  %v1879_v22 = vld [vmem:[%s2644_s3 + $0x38] sm:$0xff] }
 0x2d1   : > { %v1105_v44 = vmax.f32 %v2462_v43, 0.0  ;;  %v1107_v31 = vmax.f32 %v2465_v38, 0.0  ;;  %v966_v45 = vadd.f32 %v965_v28, %v868_v24  ;;  %v967_v32 = vpop.f32.mrb[21].mxu0  ;;  %v1056_v33 = vpop.f32.mrb[21].mxu1  ;;  %v1055_v49 = vadd.f32 %v1054_v29, %v868_v24 }
 0x2d2   : > { %v1106_v34 = vmax.f32 %v2470_v26, 0.0  ;;  %v1108_v35 = vmax.f32 %v2473_v27, 0.0  ;;  %v968_v48 = vadd.f32 %v967_v32, %v868_v24  ;;  %v1057_v36 = vadd.f32 %v1056_v33, %v868_v24  ;;  %v1125_v28 = vpop.permute.xlu1 %1124 }
 0x2d3   : > { %v1951_v40 = vpack.c.bf16 %v1105_v44, %v1101_v42  ;;  %v1959_v41 = vpack.c.bf16 %v1107_v31, %v1103_v25  ;;  %v2481_v52 = vadd.f32 %v966_v45, %v2368_v4  ;;  %v2490_v61 = vadd.f32 %v1055_v49, %v2374_v9 }
 0x2d4   : > { %v971_v46 = vpop.f32.mrb[22].mxu0  ;;  %v1060_v47 = vpop.f32.mrb[22].mxu1  ;;  %v1949_v50 = vpack.c.bf16 %v1106_v34, %v1102_v39  ;;  %v1957_v51 = vpack.c.bf16 %v1108_v35, %v1104_v30  ;;  %v2484_v53 = vadd.f32 %v968_v48, %v2370_v5  ;;  %v2487_v58 = vadd.f32 %v1057_v36, %v2372_v6 }
 0x2d5   : > { %v972_v54 = vadd.f32 %v971_v46, %v873_v37  ;;  %v1061_v55 = vadd.f32 %v1060_v47, %v873_v37  ;;  %v973_v56 = vpop.f32.mrb[23].mxu0  ;;  %v1062_v57 = vpop.f32.mrb[23].mxu1  ;;  %v1109_v3 = vmax.f32 %v2481_v52, 0.0 }
 0x2d6   : > { %v974_v59 = vadd.f32 %v973_v56, %v873_v37  ;;  %v1063_v60 = vadd.f32 %v1062_v57, %v873_v37  ;;  %1950 = vmatprep.subr.bf16.mxu0 %v1949_v50  ;;  %1958 = vmatprep.subr.bf16.mxu1 %v1957_v51  ;;  %v1110_v9 = vmax.f32 %v2484_v53, 0.0  ;;  %v1120_v39 = vpop.permute.xlu0 %1119 }
 0x2d7   : > { %v2493_v4 = vadd.f32 %v972_v54, %v2376_v10  ;;  %v2496_v5 = vadd.f32 %v1061_v55, %v2378_v11  ;;  %1952 = vmatpush1.bf16.msra.mxu0 %v1951_v40  ;;  %1960 = vmatpush1.bf16.msra.mxu1 %v1959_v41  ;;  %v1112_v10 = vmax.f32 %v2487_v58, 0.0 }
 0x2d8   : > { %v2499_v62 = vadd.f32 %v974_v59, %v2380_v14  ;;  %v2502_v6 = vadd.f32 %v1063_v60, %v2382_v15  ;;  %v1111_v14 = vmax.f32 %v2490_v61, 0.0 }
 0x2d9   : > { %v1113_v63 = vmax.f32 %v2493_v4, 0.0  ;;  %v1115_v1 = vmax.f32 %v2496_v5, 0.0 }
 0x2da   : > { %v1114_v2 = vmax.f32 %v2499_v62, 0.0  ;;  %v1116_v11 = vmax.f32 %v2502_v6, 0.0 }
 0x2db   : > { %v1955_v15 = vpack.c.bf16 %v1113_v63, %v1109_v3  ;;  %v1963_v18 = vpack.c.bf16 %v1115_v1, %v1111_v14  ;;  %v1130_v1 = vpop.permute.xlu0 %1129 }
 0x2dc   : > { %v1953_v13 = vpack.c.bf16 %v1114_v2, %v1110_v9  ;;  %v1961_v16 = vpack.c.bf16 %v1116_v11, %v1112_v10  ;;  %v1135_v2 = vpop.permute.xlu1 %1134 }
 0x2de   : > { %1954 = vmatprep.subr.bf16.mxu0 %v1953_v13  ;;  %1962 = vmatprep.subr.bf16.mxu1 %v1961_v16 }
 0x2df   : > { %1956 = vmatpush1.bf16.msra.mxu0 %v1955_v15  ;;  %1964 = vmatpush1.bf16.msra.mxu1 %v1963_v18 }
 0x2e2   : > { %1892 = vmatmul.mubr.msk.f32.vlgmr.msra.gmra.mrb[24].mxu0 %vm648_vm2, %v1876_v19  ;;  %1896 = vmatmul.mubr.msk.f32.vlgmr.msra.gmra.mrb[24].mxu1 %vm648_vm2, %v1876_v19 }
 0x2e3   : > { %1219 = vmatprep.mubr.f32.mxu0 %v2138_v0  ;;  %1308 = vmatprep.mubr.f32.mxu1 %v2138_v0 }
 0x2e6   : > { %1893 = vmatmul.mubr.msk.f32.gmra.mrb[26].mxu0 %vm648_vm2, %v1877_v20  ;;  %1897 = vmatmul.mubr.msk.f32.gmra.mrb[26].mxu1 %vm648_vm2, %v1877_v20 }
 0x2e7   : > { %1225 = vmatprep.mubr.f32.mxu0 %v2138_v0  ;;  %1314 = vmatprep.mubr.f32.mxu1 %v2138_v0 }
 0x2ea   : > { %1894 = vmatmul.mubr.msk.f32.gmra.mrb[28].mxu0 %vm648_vm2, %v1878_v21  ;;  %1898 = vmatmul.mubr.msk.f32.gmra.mrb[28].mxu1 %vm648_vm2, %v1878_v21 }
 0x2eb   : > { %1231 = vmatprep.mubr.f32.mxu0 %v2138_v0  ;;  %1320 = vmatprep.mubr.f32.mxu1 %v2138_v0 }
 0x2ee   : > { %1895 = vmatmul.mubr.msk.f32.gmra.mrb[30].mxu0 %vm648_vm2, %v1879_v22  ;;  %1899 = vmatmul.mubr.msk.f32.gmra.mrb[30].mxu1 %vm648_vm2, %v1879_v22 }
 0x2ef   : > { %1439 = vmatprep.mubr.f32.mxu0 %v2138_v0  ;;  %1528 = vmatprep.mubr.f32.mxu1 %v2138_v0 }
 0x3b5   : > { %v1215_v23 = vpop.f32.mrb[24].mxu0  ;;  %v1304_v24 = vpop.f32.mrb[24].mxu1 }
 0x3b6   : > { %v1217_v42 = vpop.f32.mrb[25].mxu0  ;;  %v1306_v25 = vpop.f32.mrb[25].mxu1  ;;  %v1216_v29 = vadd.f32 %v1215_v23, %v1120_v39  ;;  %v1305_v30 = vadd.f32 %v1304_v24, %v1120_v39 }
 0x3b7   : > { %v1218_v44 = vadd.f32 %v1217_v42, %v1120_v39  ;;  %v1307_v31 = vadd.f32 %v1306_v25, %v1120_v39 }
 0x3b8   : > { %v1327_v49 = vmax.f32 %v1216_v29, 0.0  ;;  %v1329_v40 = vmax.f32 %v1305_v30, 0.0 }
 0x3b9   : > { %v1221_v45 = vpop.f32.mrb[26].mxu0  ;;  %v1310_v32 = vpop.f32.mrb[26].mxu1  ;;  %v1328_v47 = vmax.f32 %v1218_v44, 0.0  ;;  %v1330_v50 = vmax.f32 %v1307_v31, 0.0 }
 0x3ba   : > { %v1222_v33 = vadd.f32 %v1221_v45, %v1125_v28  ;;  %v1311_v34 = vadd.f32 %v1310_v32, %v1125_v28  ;;  %v1223_v35 = vpop.f32.mrb[27].mxu0  ;;  %v1312_v48 = vpop.f32.mrb[27].mxu1 }
 0x3bb   : > { %v1224_v36 = vadd.f32 %v1223_v35, %v1125_v28  ;;  %v1313_v37 = vadd.f32 %v1312_v48, %v1125_v28  ;;  %v1885_v35 = vld [vmem:[%s2646_s5 + $0x28] sm:$0xff]  ;;  %v1886_v48 = vld [vmem:[%s2646_s5 + $0x30] sm:$0xff] }
 0x3bc   : > { %v1331_v41 = vmax.f32 %v1222_v33, 0.0  ;;  %v1333_v46 = vmax.f32 %v1311_v34, 0.0  ;;  %v1884_v34 = vld [vmem:[%s2646_s5 + $0x20] sm:$0xff] }
 0x3bd   : > { %v1332_v51 = vmax.f32 %v1224_v36, 0.0  ;;  %v1334_v54 = vmax.f32 %v1313_v37, 0.0  ;;  %v1227_v55 = vpop.f32.mrb[28].mxu0  ;;  %v1316_v56 = vpop.f32.mrb[28].mxu1  ;;  %v1887_v36 = vld [vmem:[%s2646_s5 + $0x38] sm:$0xff] }
 0x3be   : > { %v1967_v57 = vpack.c.bf16 %v1331_v41, %v1327_v49  ;;  %v1975_v59 = vpack.c.bf16 %v1333_v46, %v1329_v40  ;;  %v1229_v60 = vpop.f32.mrb[29].mxu0  ;;  %v1318_v63 = vpop.f32.mrb[29].mxu1  ;;  %v1228_v11 = vadd.f32 %v1227_v55, %v1130_v1  ;;  %v1317_v3 = vadd.f32 %v1316_v56, %v1130_v1 }
 0x3bf   : > { %v1965_v9 = vpack.c.bf16 %v1332_v51, %v1328_v47  ;;  %v1973_v10 = vpack.c.bf16 %v1334_v54, %v1330_v50  ;;  %v1230_v14 = vadd.f32 %v1229_v60, %v1130_v1  ;;  %v1319_v13 = vadd.f32 %v1318_v63, %v1130_v1  ;;  %v1346_v37 = vpop.permute.xlu0 %1345  ;;  %v1351_v55 = vpop.permute.xlu1 %1350 }
 0x3c0   : > { %v1335_v24 = vmax.f32 %v1228_v11, 0.0  ;;  %v1337_v42 = vmax.f32 %v1317_v3, 0.0 }
 0x3c1   : > { %v1233_v16 = vpop.f32.mrb[30].mxu0  ;;  %v1322_v15 = vpop.f32.mrb[30].mxu1  ;;  %1966 = vmatprep.subr.bf16.mxu0 %v1965_v9  ;;  %1974 = vmatprep.subr.bf16.mxu1 %v1973_v10  ;;  %v1336_v28 = vmax.f32 %v1230_v14, 0.0  ;;  %v1338_v29 = vmax.f32 %v1319_v13, 0.0 }
 0x3c2   : > { %v1234_v18 = vadd.f32 %v1233_v16, %v1135_v2  ;;  %v1323_v19 = vadd.f32 %v1322_v15, %v1135_v2  ;;  %v1235_v20 = vpop.f32.mrb[31].mxu0  ;;  %v1324_v21 = vpop.f32.mrb[31].mxu1  ;;  %1968 = vmatpush1.bf16.msra.mxu0 %v1967_v57  ;;  %1976 = vmatpush1.bf16.msra.mxu1 %v1975_v59 }
 0x3c3   : > { %v1236_v22 = vadd.f32 %v1235_v20, %v1135_v2  ;;  %v1325_v23 = vadd.f32 %v1324_v21, %v1135_v2  ;;  %v1356_v14 = vpop.permute.xlu0 %1355 }
 0x3c4   : > { %v1339_v25 = vmax.f32 %v1234_v18, 0.0  ;;  %v1341_v39 = vmax.f32 %v1323_v19, 0.0 }
 0x3c5   : > { %v1340_v30 = vmax.f32 %v1236_v22, 0.0  ;;  %v1342_v44 = vmax.f32 %v1325_v23, 0.0 }
 0x3c6   : > { %v1971_v31 = vpack.c.bf16 %v1339_v25, %v1335_v24  ;;  %v1979_v45 = vpack.c.bf16 %v1341_v39, %v1337_v42 }
 0x3c7   : > { %v1969_v32 = vpack.c.bf16 %v1340_v30, %v1336_v28  ;;  %v1977_v33 = vpack.c.bf16 %v1342_v44, %v1338_v29  ;;  %v1361_v30 = vpop.permute.xlu1 %1360 }
 0x3c9   : > { %1970 = vmatprep.subr.bf16.mxu0 %v1969_v32  ;;  %1978 = vmatprep.subr.bf16.mxu1 %v1977_v33 }
 0x3ca   : > { %1972 = vmatpush1.bf16.msra.mxu0 %v1971_v31  ;;  %1980 = vmatpush1.bf16.msra.mxu1 %v1979_v45 }
 0x3cd   : > { %1900 = vmatmul.mubr.msk.f32.vlgmr.msra.gmra.mrb[32].mxu0 %vm648_vm2, %v1884_v34  ;;  %1904 = vmatmul.mubr.msk.f32.vlgmr.msra.gmra.mrb[32].mxu1 %vm648_vm2, %v1884_v34 }
 0x3ce   : > { %1445 = vmatprep.mubr.f32.mxu0 %v2138_v0  ;;  %1534 = vmatprep.mubr.f32.mxu1 %v2138_v0 }
 0x3d1   : > { %1901 = vmatmul.mubr.msk.f32.gmra.mrb[34].mxu0 %vm648_vm2, %v1885_v35  ;;  %1905 = vmatmul.mubr.msk.f32.gmra.mrb[34].mxu1 %vm648_vm2, %v1885_v35 }
 0x3d2   : > { %1451 = vmatprep.mubr.f32.mxu0 %v2138_v0  ;;  %1540 = vmatprep.mubr.f32.mxu1 %v2138_v0 }
 0x3d5   : > { %1902 = vmatmul.mubr.msk.f32.gmra.mrb[36].mxu0 %vm648_vm2, %v1886_v48  ;;  %1906 = vmatmul.mubr.msk.f32.gmra.mrb[36].mxu1 %vm648_vm2, %v1886_v48 }
 0x3d6   : > { %1457 = vmatprep.mubr.f32.mxu0 %v2138_v0  ;;  %1546 = vmatprep.mubr.f32.mxu1 %v2138_v0 }
 0x3d9   : > { %1903 = vmatmul.mubr.msk.f32.gmra.mrb[38].mxu0 %vm648_vm2, %v1887_v36  ;;  %1907 = vmatmul.mubr.msk.f32.gmra.mrb[38].mxu1 %vm648_vm2, %v1887_v36 }
 0x3da   : > { %1659 = vmatprep.mubr.f32.mxu0 %v2138_v0  ;;  %1730 = vmatprep.mubr.f32.mxu1 %v2138_v0 }
 0x4a0   : > { %v1441_v49 = vpop.f32.mrb[32].mxu0  ;;  %v1530_v40 = vpop.f32.mrb[32].mxu1 }
 0x4a1   : > { %v1442_v41 = vadd.f32 %v1441_v49, %v1346_v37  ;;  %v1531_v46 = vadd.f32 %v1530_v40, %v1346_v37  ;;  %v1443_v47 = vpop.f32.mrb[33].mxu0  ;;  %v1532_v50 = vpop.f32.mrb[33].mxu1 }
 0x4a2   : > { %v1444_v51 = vadd.f32 %v1443_v47, %v1346_v37  ;;  %v1533_v54 = vadd.f32 %v1532_v50, %v1346_v37 }
 0x4a3   : > { %v1553_v56 = vadd.f32 %v1442_v41, %v2449_v7  ;;  %v1555_v57 = vadd.f32 %v1531_v46, %v2452_v8 }
 0x4a4   : > { %v1554_v59 = vadd.f32 %v1444_v51, %v2455_v12  ;;  %v1556_v60 = vadd.f32 %v1533_v54, %v2458_v17  ;;  %v1447_v63 = vpop.f32.mrb[34].mxu0  ;;  %v1536_v0 = vpop.f32.mrb[34].mxu1 }
 0x4a5   : > { %v1448_v1 = vadd.f32 %v1447_v63, %v1351_v55  ;;  %v1537_v9 = vadd.f32 %v1536_v0, %v1351_v55  ;;  %v1449_v10 = vpop.f32.mrb[35].mxu0  ;;  %v1538_v2 = vpop.f32.mrb[35].mxu1  ;;  %v1570_v13 = vmax.f32 %v1553_v56, 0.0  ;;  %v1572_v16 = vmax.f32 %v1555_v57, 0.0 }
 0x4a6   : > { %v1450_v11 = vadd.f32 %v1449_v10, %v1351_v55  ;;  %v1539_v3 = vadd.f32 %v1538_v2, %v1351_v55  ;;  %v1571_v8 = vmax.f32 %v1554_v59, 0.0  ;;  %v1573_v18 = vmax.f32 %v1556_v60, 0.0 }
 0x4a7   : > { %v1557_v15 = vadd.f32 %v1448_v1, %v2462_v43  ;;  %v1559_v7 = vadd.f32 %v1537_v9, %v2465_v38 }
 0x4a8   : > { %v1558_v12 = vadd.f32 %v1450_v11, %v2470_v26  ;;  %v1560_v17 = vadd.f32 %v1539_v3, %v2473_v27  ;;  %v1453_v19 = vpop.f32.mrb[36].mxu0  ;;  %v1542_v20 = vpop.f32.mrb[36].mxu1 }
 0x4a9   : > { %v1574_v21 = vmax.f32 %v1557_v15, 0.0  ;;  %v1576_v22 = vmax.f32 %v1559_v7, 0.0  ;;  %v1454_v23 = vadd.f32 %v1453_v19, %v1356_v14  ;;  %v1543_v24 = vadd.f32 %v1542_v20, %v1356_v14  ;;  %v1455_v42 = vpop.f32.mrb[37].mxu0  ;;  %v1544_v25 = vpop.f32.mrb[37].mxu1 }
 0x4aa   : > { %v1575_v39 = vmax.f32 %v1558_v12, 0.0  ;;  %v1577_v28 = vmax.f32 %v1560_v17, 0.0  ;;  %v1456_v29 = vadd.f32 %v1455_v42, %v1356_v14  ;;  %v1545_v43 = vadd.f32 %v1544_v25, %v1356_v14 }
 0x4ab   : > { %v1983_v38 = vpack.c.bf16 %v1574_v21, %v1570_v13  ;;  %v1991_v44 = vpack.c.bf16 %v1576_v22, %v1572_v16  ;;  %v1561_v31 = vadd.f32 %v1454_v23, %v2481_v52  ;;  %v1563_v33 = vadd.f32 %v1543_v24, %v2490_v61 }
 0x4ac   : > { %v1459_v26 = vpop.f32.mrb[38].mxu0  ;;  %v1548_v45 = vpop.f32.mrb[38].mxu1  ;;  %v1981_v27 = vpack.c.bf16 %v1575_v39, %v1571_v8  ;;  %v1989_v32 = vpack.c.bf16 %v1577_v28, %v1573_v18  ;;  %v1562_v34 = vadd.f32 %v1456_v29, %v2484_v53  ;;  %v1564_v49 = vadd.f32 %v1545_v43, %v2487_v58 }
 0x4ad   : > { %v1460_v35 = vadd.f32 %v1459_v26, %v1361_v30  ;;  %v1549_v48 = vadd.f32 %v1548_v45, %v1361_v30  ;;  %v1461_v36 = vpop.f32.mrb[39].mxu0  ;;  %v1550_v37 = vpop.f32.mrb[39].mxu1  ;;  %v1578_v47 = vmax.f32 %v1561_v31, 0.0  ;;  %v1580_v50 = vmax.f32 %v1563_v33, 0.0 }
 0x4ae   : > { %v1462_v40 = vadd.f32 %v1461_v36, %v1361_v30  ;;  %v1551_v41 = vadd.f32 %v1550_v37, %v1361_v30  ;;  %1982 = vmatprep.subr.bf16.mxu0 %v1981_v27  ;;  %1990 = vmatprep.subr.bf16.mxu1 %v1989_v32  ;;  %v1579_v58 = vmax.f32 %v1562_v34, 0.0  ;;  %v1581_v55 = vmax.f32 %v1564_v49, 0.0 }
 0x4af   : > { %v1565_v52 = vadd.f32 %v1460_v35, %v2493_v4  ;;  %v1567_v46 = vadd.f32 %v1549_v48, %v2496_v5  ;;  %1984 = vmatpush1.bf16.msra.mxu0 %v1983_v38  ;;  %1992 = vmatpush1.bf16.msra.mxu1 %v1991_v44  ;;  %v1569_v5 = vld [vmem:[%s2648_s7] sm:$0xf] }
 0x4b0   : > { %v1566_v61 = vadd.f32 %v1462_v40, %v2499_v62  ;;  %v1568_v53 = vadd.f32 %v1551_v41, %v2502_v6  ;;  %v1590_v62 = vpop.permute.xlu0 %1589 }
 0x4b1   : > { %v1582_v51 = vmax.f32 %v1565_v52, 0.0  ;;  %v1584_v54 = vmax.f32 %v1567_v46, 0.0 }
 0x4b2   : > { %v1583_v56 = vmax.f32 %v1566_v61, 0.0  ;;  %v1585_v57 = vmax.f32 %v1568_v53, 0.0 }
 0x4b3   : > { %v1987_v59 = vpack.c.bf16 %v1582_v51, %v1578_v47  ;;  %v1995_v60 = vpack.c.bf16 %v1584_v54, %v1580_v50 }
 0x4b4   : > { %v1985_v4 = vpack.c.bf16 %v1583_v56, %v1579_v58  ;;  %v1993_v63 = vpack.c.bf16 %v1585_v57, %v1581_v55 }
 0x4b6   : > { %1986 = vmatprep.subr.bf16.mxu0 %v1985_v4  ;;  %1994 = vmatprep.subr.bf16.mxu1 %v1993_v63 }
 0x4b7   : > { %1988 = vmatpush1.bf16.msra.mxu0 %v1987_v59  ;;  %1996 = vmatpush1.bf16.msra.mxu1 %v1995_v60 }
 0x4ba   : > { %1908 = vmatmul.mubr.msk.f32.vlgmr.msra.gmra.mrb[40].mxu0 %vm648_vm2, %v1569_v5  ;;  %1909 = vmatmul.mubr.msk.f32.vlgmr.msra.gmra.mrb[40].mxu1 %vm648_vm2, %v1569_v5 }
 0x58d   : > { %v1661_v6 = vpop.f32.mrb[40].mxu0  ;;  %v1732_v0 = vpop.f32.mrb[40].mxu1 }
 0x58e   : > { %v1662_v1 = vadd.f32 %v1661_v6, %v1590_v62  ;;  %v1733_v9 = vadd.f32 %v1732_v0, %v1590_v62  ;;  %v1663_v10 = vpop.f32.mrb[41].mxu0  ;;  %v1734_v2 = vpop.f32.mrb[41].mxu1 }
 0x58f   : > { %v1664_v11 = vadd.f32 %v1663_v10, %v1590_v62  ;;  %v1735_v3 = vadd.f32 %v1734_v2, %v1590_v62 }
 0x591   : > { %v1741_v14 = vcombine.low %v1662_v1, %v1664_v11  ;;  %v1742_v13 = vcombine.low %v1733_v9, %v1735_v3 }
 0x593   : > { %1745 = vst [vmem:[%s350_s27] sm:$0xff] %v1741_v14  ;;  %1746 = vst [vmem:[%s350_s27 + $0x8] sm:$0xff] %v1742_v13 }
 0x594   : > { %2071 = shalt.err (!%p2068_p5)
}
 0x595   : > { %s2072_s24 = scalar_lea.hbm %s2594_s16, 256  ;;  %s2076_s28 = scalar_lea.hbm %s2650_s9, 512 }
 0x596   : > { %p2073_p6 = scmp.ne.s32.totalorder %s2594_s16, %s2072_s24  ;;  %p2077_p10 = scmp.lt.u32.totalorder %s2594_s16, %s2650_s9 }
 0x597   : > { %p2078_p11 = scmp.lt.u32.totalorder %s2076_s28, %s2072_s24  ;;  %p2080_p13 = scmp.lt.u32.totalorder %s2072_s24, %s2594_s16 }
 0x598   : > { %p2074_p7 = pnand %p2073_p6, %p2231_p4 }
 0x599   : > { %p2079_p12 = por %p2078_p11, %p2077_p10 }
 0x59a   : > { %p2075_p9 = pneg %p2074_p7 }
 0x59b   : > { %p2081_p0 = por %p2080_p13, %p2079_p12 }
 0x59d   : > { %p2082_p1 = pnand %p2081_p0, %p2075_p9 }
 0x59f   : > { %2085 = shalt.err (!%p2082_p1)
}
 0x5a0   : > { %1997 = dma.vmem_to_hbm [thread:$0]  (%p2231_p4), %s2596_s29, 256, %s2594_s16, %s1748_s18  }
 0x5a1 PF: > { %p2003_p2 = scmp.ge.s32.totalorder %s2136_s14, 2  ;;  %s1776_s12 = sand.u32 1, %s2116_s30  }
 0x5a2   : > { %s1777_s23 = scalar_lea.sflag [#allocation3], %s1776_s12 }
 0x5a3   : > { %p2000_p3 = pnand %p2003_p2, %p2238_p8 }
 0x5a5   : > { %2111 = dma.done.wait (!%p2000_p3), %s1777_s23, 256  }
 0x5a6   : > { %2113 = vsyncadd (!%p2000_p3), %s1777_s23, 4294967040  ;;  %s22_s14 = sadd.s32 1, %s2136_s14   ;;  %s2653_s30 = smov %s2120_s10 }
 0x5a7   : > { %p19_p5 = scmp.ge.s32.totalorder %s22_s14, 4   ;;  %s2654_s10 = smov %s2124_s11 }
 0x5a8   : > { %s2655_s11 = smov %s2244_s22  ;;  %s2656_s12 = smov %s2132_s13 }
 0x5a9   : > { %s2657_s13 = smov %s2659_s17  ;;  %21 = sbr.rel (!%p19_p5) target bundleno = 4 (0x4), region = 95 }
 0x5b0   :  { %1782 = vsyncpa [#allocation3], 1 }
 0x5b1   :  { %1784 = vsyncpa [#allocation3 + $0x1], 1 }

</bundles_post_ra>
